<compile_context>
chip_gen: v7x
topology: tpu7x:2x2x1
jax: 0.10.0
libtpu: 0.0.40
codegen_flags: <defaults>
</compile_context>

<pallas_src>
import jax
import jax.numpy as jnp
from jax.experimental import pallas as pl
from jax.experimental.pallas import tpu as pltpu

LEAKY_SLOPE = 0.01  # F.leaky_relu default negative_slope


def _round_up(x, m):
    return ((x + m - 1) // m) * m


def _leaky_relu(x):
    # max(x, 0.01*x) == leaky_relu(x) for slope in (0, 1)
    return jnp.maximum(x, LEAKY_SLOPE * x)


def _choose_tile(batch):
    """Batch tile size (rows). Multiple of 8, >=2 grid steps for moderate B."""
    b_pad = _round_up(max(int(batch), 1), 8)
    if b_pad <= 256:
        return b_pad                      # tiny batch: one step, no split overhead
    tb = _round_up((b_pad + 1) // 2, 8)   # >=2 steps so v7x can use both TCs
    return min(tb, 2048)                  # cap tile (VMEM headroom on all gens)


def pack_params(params, act_dim, robot_state_dim, emb_dim):
    """Pack all weights + biases into one zero-padded (rows, 256) f32 slab.

    Row layout (every region start is a multiple of 8 sublanes):
      [0, IN_PAD)        w_first  = blockdiag(w_rob1, w_obj1)   cols 0:256
      [+0, +256)         w_second = blockdiag(w_rob2, w_obj2)   cols 0:256
      [+0, +256)         w1 (256,128)                           cols 0:128
      [+0, +128)         w2 zero-padded to (128,128)            cols 0:128
      [+0, +128)         w3 zero-padded to (128,128)            cols 0:128
      [+0, +8)           bias block:
                           row 0: [b_rob1 | b_obj1]
                           row 1: [b_rob2 | b_obj2]
                           row 2: [b1     | b2_pad]
                           row 3: [b3_pad | zeros ]
    """
    rsd = robot_state_dim
    in_dim = rsd + emb_dim
    in_pad = _round_up(in_dim, 8)

    r_ws = in_pad
    r_w1 = r_ws + 256
    r_w2 = r_w1 + 256
    r_w3 = r_w2 + 128
    r_b = r_w3 + 128
    rows = r_b + 8

    slab = jnp.zeros((rows, 256), jnp.float32)
    # branch layer 1 (block-diagonal: robot -> cols 0:128, obj -> cols 128:256)
    slab = slab.at[0:rsd, 0:128].set(params["w_rob1"])
    slab = slab.at[rsd:in_dim, 128:256].set(params["w_obj1"])
    # branch layer 2 (block-diagonal keeps the two branches independent)
    slab = slab.at[r_ws:r_ws + 128, 0:128].set(params["w_rob2"])
    slab = slab.at[r_ws + 128:r_ws + 256, 128:256].set(params["w_obj2"])
    # fc1
    slab = slab.at[r_w1:r_w1 + 256, 0:128].set(params["w1"])
    # fc2 (output padded 64 -> 128 with zero columns)
    slab = slab.at[r_w2:r_w2 + 128, 0:64].set(params["w2"])
    # fc3 (input padded 64 -> 128 with zero rows, output act_dim -> 128)
    slab = slab.at[r_w3:r_w3 + 64, 0:act_dim].set(params["w3"])
    # biases
    slab = slab.at[r_b, 0:128].set(params["b_rob1"])
    slab = slab.at[r_b, 128:256].set(params["b_obj1"])
    slab = slab.at[r_b + 1, 0:128].set(params["b_rob2"])
    slab = slab.at[r_b + 1, 128:256].set(params["b_obj2"])
    slab = slab.at[r_b + 2, 0:128].set(params["b1"])
    slab = slab.at[r_b + 2, 128:128 + 64].set(params["b2"])
    slab = slab.at[r_b + 3, 0:act_dim].set(params["b3"])

    layout = dict(in_pad=in_pad, r_ws=r_ws, r_w1=r_w1, r_w2=r_w2,
                  r_w3=r_w3, r_b=r_b, rows=rows)
    return slab, layout


def _make_kernel(layout):
    in_pad = layout["in_pad"]
    r_ws, r_w1 = layout["r_ws"], layout["r_w1"]
    r_w2, r_w3, r_b = layout["r_w2"], layout["r_w3"], layout["r_b"]

    def kernel(obs_ref, slab_ref, out_ref):
        # Static slices of a VMEM ref: free, all region starts are 8-aligned.
        w_first = slab_ref[0:in_pad, :]              # (in_pad, 256)
        w_second = slab_ref[r_ws:r_ws + 256, :]      # (256, 256)
        w1 = slab_ref[r_w1:r_w1 + 256, 0:128]        # (256, 128)
        w2 = slab_ref[r_w2:r_w2 + 128, 0:128]        # (128, 128)
        w3 = slab_ref[r_w3:r_w3 + 128, 0:128]        # (128, 128)
        bias = slab_ref[r_b:r_b + 8, :]              # (8, 256) aligned block
        b_first = bias[0:1, :]
        b_second = bias[1:2, :]
        b1 = bias[2:3, 0:128]
        b2 = bias[2:3, 128:256]
        b3 = bias[3:4, 0:128]

        obs = obs_ref[...]
        # fused branch layer 1: cols 0:128 = robot branch, 128:256 = obj branch
        h = _leaky_relu(
            jnp.dot(obs, w_first, preferred_element_type=jnp.float32) + b_first)
        # fused branch layer 2 (block-diagonal keeps branches independent)
        h = _leaky_relu(
            jnp.dot(h, w_second, preferred_element_type=jnp.float32) + b_second)
        # h is already cat((robot, obj), -1) -> fc1 with the full w1
        h = _leaky_relu(
            jnp.dot(h, w1, preferred_element_type=jnp.float32) + b1)
        # fc2 / fc3, lane-padded to 128 (extra lanes are exact zeros)
        h = _leaky_relu(
            jnp.dot(h, w2, preferred_element_type=jnp.float32) + b2)
        out_ref[...] = jnp.dot(h, w3, preferred_element_type=jnp.float32) + b3

    return kernel


def make_bc_policy(params, act_dim, robot_state_dim, emb_dim):
    """Pack params once, return a jitted obs -> action callable."""
    in_dim = robot_state_dim + emb_dim
    slab, layout = pack_params(params, act_dim, robot_state_dim, emb_dim)
    in_pad = layout["in_pad"]
    kernel = _make_kernel(layout)

    def _forward(obs, slab_arg):
        batch = obs.shape[0]
        if in_pad != in_dim:
            obs = jnp.pad(obs, ((0, 0), (0, in_pad - in_dim)))
        tb = _choose_tile(batch)
        grid = (pl.cdiv(batch, tb),)
        out = pl.pallas_call(
            kernel,
            out_shape=jax.ShapeDtypeStruct((batch, 128), jnp.float32),
            grid=grid,
            in_specs=[
                pl.BlockSpec((tb, in_pad), lambda i: (i, 0)),
                pl.BlockSpec(slab_arg.shape, lambda i: (0, 0)),  # VMEM-resident
            ],
            out_specs=pl.BlockSpec((tb, 128), lambda i: (i, 0)),
            compiler_params=pltpu.CompilerParams(
                dimension_semantics=("parallel",),
            ),
        )(obs, slab_arg)
        return out[:, :act_dim]

    forward_jit = jax.jit(_forward)

    def forward(obs):
        return forward_jit(obs, slab)

    return forward


def init_params(key, act_dim, robot_state_dim, emb_dim):
    """Deterministic synthetic params. Weights stored as (in, out)."""
    shapes = {
        "w_obj1": (emb_dim, 128), "b_obj1": (128,),
        "w_obj2": (128, 128),     "b_obj2": (128,),
        "w_rob1": (robot_state_dim, 128), "b_rob1": (128,),
        "w_rob2": (128, 128),     "b_rob2": (128,),
        "w1": (256, 128),         "b1": (128,),
        "w2": (128, 64),          "b2": (64,),
        "w3": (64, act_dim),      "b3": (act_dim,),
    }
    params = {}
    keys = jax.random.split(key, len(shapes))
    for (name, shape), k in zip(shapes.items(), keys):
        fan_in = shape[0]
        scale = 1.0 / jnp.sqrt(jnp.float32(max(fan_in, 1)))
        params[name] = jax.random.uniform(k, shape, jnp.float32, -1.0, 1.0) * scale
    return params


def reference_forward(obs, params, robot_state_dim):
    """Pure-JAX reference mirroring the PyTorch module."""
    def lrelu(x):
        return jnp.where(x > 0, x, LEAKY_SLOPE * x)

    robot_state = obs[:, :robot_state_dim]
    obj_emb = obs[:, robot_state_dim:]
    obj = lrelu(obj_emb @ params["w_obj1"] + params["b_obj1"])
    obj = lrelu(obj @ params["w_obj2"] + params["b_obj2"])
    robot = lrelu(robot_state @ params["w_rob1"] + params["b_rob1"])
    robot = lrelu(robot @ params["w_rob2"] + params["b_rob2"])
    x = jnp.concatenate([robot, obj], axis=-1)
    x = lrelu(x @ params["w1"] + params["b1"])
    x = lrelu(x @ params["w2"] + params["b2"])
    return x @ params["w3"] + params["b3"]


if __name__ == "__main__":
    act_dim = 3
    robot_state_dim = 8
    emb_dim = 32
    batch = 8

    key = jax.random.PRNGKey(0)
    k_params, k_obs, k_obs2 = jax.random.split(key, 3)
    params = init_params(k_params, act_dim, robot_state_dim, emb_dim)
    obs = jax.random.normal(k_obs, (batch, robot_state_dim + emb_dim), jnp.float32)

    forward = make_bc_policy(params, act_dim, robot_state_dim, emb_dim)

    # small-batch path (single grid step)
    out = jax.block_until_ready(forward(obs))
    ref = reference_forward(obs, params, robot_state_dim)
    assert out.shape == (batch, act_dim)
    assert jnp.allclose(out, ref, atol=1e-4, rtol=1e-4), "mismatch vs reference (B=8)"

    # moderate-batch path (>=2 grid steps, partial last block)
    obs_big = jax.random.normal(k_obs2, (300, robot_state_dim + emb_dim), jnp.float32)
    out_big = jax.block_until_ready(forward(obs_big))
    ref_big = reference_forward(obs_big, params, robot_state_dim)
    assert out_big.shape == (300, act_dim)
    assert jnp.allclose(out_big, ref_big, atol=1e-4, rtol=1e-4), "mismatch vs reference (B=300)"

    print("KERNEL_OK")
</pallas_src>

<mosaic_0001>
module attributes {stable_mosaic.version = 11 : i64} {
  func.func @kernel(%arg0: i32, %arg1: memref<8x40xf32, #tpu.memory_space<vmem>>, %arg2: memref<816x256xf32, #tpu.memory_space<vmem>>, %arg3: memref<8x128xf32, #tpu.memory_space<vmem>>) attributes {dimension_semantics = [#tpu.dimension_semantics<parallel>], iteration_bounds = array<i64: 1>, scalar_prefetch = 0 : i64, scratch_operands = 0 : i64, tpu.core_type = #tpu.core_type<tc>, window_params = [{transform_indices = @transform_0, window_bounds = array<i64: 8, 40>}, {pipeline_mode = #tpu.pipeline_mode<synchronous>, transform_indices = @transform_1, window_bounds = array<i64: 816, 256>}, {transform_indices = @transform_2, window_bounds = array<i64: 8, 128>}]} {
    %c0 = arith.constant 0 : index
    %c0_0 = arith.constant 0 : index
    %0 = vector.load %arg2[%c0, %c0_0] : memref<816x256xf32, #tpu.memory_space<vmem>>, vector<40x256xf32>
    %c40 = arith.constant 40 : index
    %c0_1 = arith.constant 0 : index
    %1 = vector.load %arg2[%c40, %c0_1] : memref<816x256xf32, #tpu.memory_space<vmem>>, vector<256x256xf32>
    %c296 = arith.constant 296 : index
    %c0_2 = arith.constant 0 : index
    %2 = vector.load %arg2[%c296, %c0_2] : memref<816x256xf32, #tpu.memory_space<vmem>>, vector<256x128xf32>
    %c552 = arith.constant 552 : index
    %c0_3 = arith.constant 0 : index
    %3 = vector.load %arg2[%c552, %c0_3] : memref<816x256xf32, #tpu.memory_space<vmem>>, vector<128x128xf32>
    %c680 = arith.constant 680 : index
    %c0_4 = arith.constant 0 : index
    %4 = vector.load %arg2[%c680, %c0_4] : memref<816x256xf32, #tpu.memory_space<vmem>>, vector<128x128xf32>
    %c808 = arith.constant 808 : index
    %c0_5 = arith.constant 0 : index
    %5 = vector.load %arg2[%c808, %c0_5] : memref<816x256xf32, #tpu.memory_space<vmem>>, vector<8x256xf32>
    %6 = vector.extract_strided_slice %5 {offsets = [0, 0], sizes = [1, 256], strides = [1, 1]} : vector<8x256xf32> to vector<1x256xf32>
    %7 = vector.extract_strided_slice %5 {offsets = [1, 0], sizes = [1, 256], strides = [1, 1]} : vector<8x256xf32> to vector<1x256xf32>
    %8 = vector.extract_strided_slice %5 {offsets = [2, 0], sizes = [1, 128], strides = [1, 1]} : vector<8x256xf32> to vector<1x128xf32>
    %9 = vector.extract_strided_slice %5 {offsets = [2, 128], sizes = [1, 128], strides = [1, 1]} : vector<8x256xf32> to vector<1x128xf32>
    %10 = vector.extract_strided_slice %5 {offsets = [3, 0], sizes = [1, 128], strides = [1, 1]} : vector<8x256xf32> to vector<1x128xf32>
    %c0_6 = arith.constant 0 : index
    %c0_7 = arith.constant 0 : index
    %11 = vector.load %arg1[%c0_6, %c0_7] : memref<8x40xf32, #tpu.memory_space<vmem>>, vector<8x40xf32>
    %cst = arith.constant dense<0.000000e+00> : vector<8x256xf32>
    %12 = tpu.matmul %11, %0, %cst {dimension_numbers = #tpu.dot_dimension_numbers<[1], [0], [0], [1], [0, 0, 1, 1], [], []>} : vector<8x40xf32>, vector<40x256xf32>, vector<8x256xf32> -> vector<8x256xf32>
    %13 = vector.broadcast %6 : vector<1x256xf32> to vector<8x256xf32>
    %14 = arith.addf %12, %13 : vector<8x256xf32>
    %cst_8 = arith.constant 0.00999999977 : f32
    %15 = vector.broadcast %cst_8 : f32 to vector<8x256xf32>
    %16 = arith.mulf %15, %14 : vector<8x256xf32>
    %17 = arith.maximumf %14, %16 : vector<8x256xf32>
    %cst_9 = arith.constant dense<0.000000e+00> : vector<8x256xf32>
    %18 = tpu.matmul %17, %1, %cst_9 {dimension_numbers = #tpu.dot_dimension_numbers<[1], [0], [0], [1], [0, 0, 1, 1], [], []>} : vector<8x256xf32>, vector<256x256xf32>, vector<8x256xf32> -> vector<8x256xf32>
    %19 = vector.broadcast %7 : vector<1x256xf32> to vector<8x256xf32>
    %20 = arith.addf %18, %19 : vector<8x256xf32>
    %cst_10 = arith.constant 0.00999999977 : f32
    %21 = vector.broadcast %cst_10 : f32 to vector<8x256xf32>
    %22 = arith.mulf %21, %20 : vector<8x256xf32>
    %23 = arith.maximumf %20, %22 : vector<8x256xf32>
    %cst_11 = arith.constant dense<0.000000e+00> : vector<8x128xf32>
    %24 = tpu.matmul %23, %2, %cst_11 {dimension_numbers = #tpu.dot_dimension_numbers<[1], [0], [0], [1], [0, 0, 1, 1], [], []>} : vector<8x256xf32>, vector<256x128xf32>, vector<8x128xf32> -> vector<8x128xf32>
    %25 = vector.broadcast %8 : vector<1x128xf32> to vector<8x128xf32>
    %26 = arith.addf %24, %25 : vector<8x128xf32>
    %cst_12 = arith.constant 0.00999999977 : f32
    %27 = vector.broadcast %cst_12 : f32 to vector<8x128xf32>
    %28 = arith.mulf %27, %26 : vector<8x128xf32>
    %29 = arith.maximumf %26, %28 : vector<8x128xf32>
    %cst_13 = arith.constant dense<0.000000e+00> : vector<8x128xf32>
    %30 = tpu.matmul %29, %3, %cst_13 {dimension_numbers = #tpu.dot_dimension_numbers<[1], [0], [0], [1], [0, 0, 1, 1], [], []>} : vector<8x128xf32>, vector<128x128xf32>, vector<8x128xf32> -> vector<8x128xf32>
    %31 = vector.broadcast %9 : vector<1x128xf32> to vector<8x128xf32>
    %32 = arith.addf %30, %31 : vector<8x128xf32>
    %cst_14 = arith.constant 0.00999999977 : f32
    %33 = vector.broadcast %cst_14 : f32 to vector<8x128xf32>
    %34 = arith.mulf %33, %32 : vector<8x128xf32>
    %35 = arith.maximumf %32, %34 : vector<8x128xf32>
    %cst_15 = arith.constant dense<0.000000e+00> : vector<8x128xf32>
    %36 = tpu.matmul %35, %4, %cst_15 {dimension_numbers = #tpu.dot_dimension_numbers<[1], [0], [0], [1], [0, 0, 1, 1], [], []>} : vector<8x128xf32>, vector<128x128xf32>, vector<8x128xf32> -> vector<8x128xf32>
    %37 = vector.broadcast %10 : vector<1x128xf32> to vector<8x128xf32>
    %38 = arith.addf %36, %37 : vector<8x128xf32>
    %c0_16 = arith.constant 0 : index
    %c0_17 = arith.constant 0 : index
    %39 = vector.load %arg3[%c0_16, %c0_17] : memref<8x128xf32, #tpu.memory_space<vmem>>, vector<8x128xf32>
    tpu.vector_store %arg3[%c0_16, %c0_17], %38 {strides = array<i32>} : memref<8x128xf32, #tpu.memory_space<vmem>>, vector<8x128xf32>,
    return
  }
  func.func @transform_0(%arg0: i32) -> (i32, i32) {
    %c0_i32 = arith.constant 0 : i32
    %c0_i32_0 = arith.constant 0 : i32
    return %arg0, %c0_i32 : i32, i32
  }
  func.func @transform_1(%arg0: i32) -> (i32, i32) {
    %c0_i32 = arith.constant 0 : i32
    %c0_i32_0 = arith.constant 0 : i32
    %c0_i32_1 = arith.constant 0 : i32
    return %c0_i32, %c0_i32_0 : i32, i32
  }
  func.func @transform_2(%arg0: i32) -> (i32, i32) {
    %c0_i32 = arith.constant 0 : i32
    %c0_i32_0 = arith.constant 0 : i32
    return %arg0, %c0_i32 : i32, i32
  }
}

</mosaic_0001>

<bundles_post_ra>
// kernel: _forward.1
= control target key start
LH: loop header
LB: loop body
LE: loop exit
PB: predicated region body
PF: predicated region fallthrough
CT: control target
= control target key end

     0   :  { %7 = vsyncpa [#allocation3], 0  ;;  %s1020_s0 = inlined_call_operand.hbm [shape: f32[8,40], index: 0, kind: input, shape index: {}]   ;;  %s1021_s1 = inlined_call_operand.hbm [shape: f32[816,256], index: 1, kind: input, shape index: {}]   ;;  %s1022_s2 = inlined_call_operand.vmem [shape: f32[8,128], index: 2, kind: output, shape index: {}]  }
   0x1   :  { %8 = vsyncpa [#allocation5], 0  ;;  %s928_s9 = smov [#allocation2]   ;;  %s929_s11 = smov [#allocation4]  }
   0x2   :  { %s15_s10 = sshll.u32 %s928_s9, 4  ;;  %s24_s12 = sshll.u32 %s929_s11, 4  ;;  %s16_s10 = int_to_ptr.vmem [resolvable:$true] %s15_s10  ;;  %s950_s12 = int_to_ptr.vmem [resolvable:$true] %s24_s12 }
   0x3   :  { %s880_s15 = scalar_lea.hbm %s1020_s0, 128 }
   0x4   :  { %p881_p0 = scmp.ne.s32.totalorder %s1020_s0, %s880_s15  ;;  %p884_p1 = scmp.lt.u32.totalorder %s880_s15, %s1020_s0 }
   0x6   :  { %p886_p2 = pnand %p884_p1, %p881_p0 }
   0x8   :  { %889 = shalt.err (!%p886_p2)
}
   0x9   :  { %s890_s20 = scalar_lea.vmem %s16_s10, 128  ;;  %p895_p4 = scmp.lt.s32.totalorder %s16_s10, %s16_s10 }
   0xa   :  { %p891_p3 = scmp.ne.s32.totalorder %s16_s10, %s890_s20  ;;  %p896_p5 = scmp.lt.s32.totalorder %s890_s20, %s890_s20 }
   0xc   :  { %p897_p6 = por %p896_p5, %p895_p4 }
   0xe   :  { %p898_p7 = pnand %p897_p6, %p891_p3 }
  0x10   :  { %901 = shalt.err (!%p898_p7)
}
  0x11   :  { %18 = dma.hbm_to_vmem [thread:$0]  %s1020_s0, 128, %s16_s10, [#allocation3]  }
  0x12   :  { %s902_s25 = scalar_lea.hbm %s1021_s1, 26112 }
  0x13   :  { %p903_p8 = scmp.ne.s32.totalorder %s1021_s1, %s902_s25  ;;  %p906_p9 = scmp.lt.u32.totalorder %s902_s25, %s1021_s1 }
  0x15   :  { %p908_p10 = pnand %p906_p9, %p903_p8 }
  0x17   :  { %911 = shalt.err (!%p908_p10)
}
  0x18   :  { %s912_s30 = scalar_lea.vmem %s950_s12, 26112  ;;  %p917_p12 = scmp.lt.s32.totalorder %s950_s12, %s950_s12 }
  0x19   :  { %p913_p11 = scmp.ne.s32.totalorder %s950_s12, %s912_s30  ;;  %p918_p13 = scmp.lt.s32.totalorder %s912_s30, %s912_s30 }
  0x1b   :  { %p919_p0 = por %p918_p13, %p917_p12 }
  0x1d   :  { %p920_p1 = pnand %p919_p0, %p913_p11 }
  0x1f   :  { %923 = shalt.err (!%p920_p1)
}
  0x20   :  { %s930_s0 = smov 256   ;;  %s931_s3 = smov 16  }
  0x21   :  { %30 = dma.hbm_to_vmem [thread:$0]  %s1021_s1, 26112, %s950_s12, [#allocation5], %s930_s0, %s930_s0, %s931_s3  }
  0x22   :  { %924 = dma.done.wait [#allocation3], 128  }
  0x23   :  { %925 = vsyncadd [#allocation3], 4294967168 }
  0x24   :  { %926 = dma.done.wait [#allocation5], 26112  }
  0x25   :  { %927 = vsyncadd [#allocation5], 4294941184  ;;  %v932_v0 = vmov 0.0   ;;  %v38_v1 = vld [vmem:[#allocation4 + $0x8] sm:$0xff]  ;;  %v40_v2 = vld [vmem:[#allocation4 + $0x18] sm:$0xff]  ;;  %vm186_vm0 = vcmask 326656  }
  0x26   :  { %254 = vmatprep.mubr.f32.mxu0 %v932_v0  ;;  %v37_v3 = vld [vmem:[#allocation4] sm:$0xff]  ;;  %v721_v4 = vpack.c.bf16 %v40_v2, %v38_v1  ;;  %v39_v5 = vld [vmem:[#allocation4 + $0x10] sm:$0xff]  ;;  %v42_v6 = vld [vmem:[#allocation4 + $0x28] sm:$0xff]  ;;  %vm934_vm1 = vmmov 0  }
  0x27   :  { %v44_v7 = vld [vmem:[#allocation4 + $0x38] sm:$0xff]  ;;  %v723_v8 = vpack.c.bf16 %v39_v5, %v37_v3  ;;  %v41_v10 = vld [vmem:[#allocation4 + $0x20] sm:$0xff]  ;;  %v43_v11 = vld [vmem:[#allocation4 + $0x30] sm:$0xff] }
  0x28   :  { %v725_v9 = vpack.c.bf16 %v44_v7, %v42_v6  ;;  %722 = vmatprep.subr.bf16.mxu0 %v721_v4  ;;  %v48_v12 = vld [vmem:[#allocation4 + $0x58] sm:$0xff]  ;;  %v727_v13 = vpack.c.bf16 %v43_v11, %v41_v10  ;;  %v46_v14 = vld [vmem:[#allocation4 + $0x48] sm:$0xff]  ;;  %v47_v16 = vld [vmem:[#allocation4 + $0x50] sm:$0xff] }
  0x29   :  { %724 = vmatpush1.bf16.msra.mxu0 %v723_v8  ;;  %v50_v15 = vld [vmem:[#allocation4 + $0x68] sm:$0xff]  ;;  %v49_v17 = vld [vmem:[#allocation4 + $0x60] sm:$0xff]  ;;  %v52_v20 = vld [vmem:[#allocation4 + $0x78] sm:$0xff] }
  0x2a   :  { %726 = vmatprep.subr.bf16.mxu0 %v725_v9  ;;  %v729_v18 = vpack.c.bf16 %v50_v15, %v48_v12  ;;  %v731_v19 = vpack.c.bf16 %v49_v17, %v47_v16  ;;  %v54_v21 = vld [vmem:[#allocation4 + $0x88] sm:$0xff]  ;;  %v51_v22 = vld [vmem:[#allocation4 + $0x70] sm:$0xff]  ;;  %v53_v24 = vld [vmem:[#allocation4 + $0x80] sm:$0xff] }
  0x2b   :  { %v733_v23 = vpack.c.bf16 %v54_v21, %v52_v20  ;;  %v56_v25 = vld [vmem:[#allocation4 + $0x98] sm:$0xff]  ;;  %v58_v26 = vld [vmem:[#allocation4 + $0xa8] sm:$0xff]  ;;  %v735_v27 = vpack.c.bf16 %v53_v24, %v51_v22  ;;  %v45_v28 = vld [vmem:[#allocation4 + $0x40] sm:$0xff] }
  0x2c   :  { %730 = vmatprep.subr.bf16.mxu1 %v729_v18  ;;  %v737_v29 = vpack.c.bf16 %v58_v26, %v56_v25  ;;  %v55_v30 = vld [vmem:[#allocation4 + $0x90] sm:$0xff]  ;;  %v57_v31 = vld [vmem:[#allocation4 + $0xa0] sm:$0xff]  ;;  %v177_v32 = vld [vmem:[#allocation2] sm:$0xff] }
  0x2d   :  { %728 = vmatpush1.bf16.msra.mxu0 %v727_v13  ;;  %732 = vmatpush1.bf16.msra.mxu1 %v731_v19  ;;  %v60_v33 = vld [vmem:[#allocation4 + $0xb8] sm:$0xff]  ;;  %v62_v34 = vld [vmem:[#allocation4 + $0xc8] sm:$0xff]  ;;  %v739_v35 = vpack.c.bf16 %v57_v31, %v55_v30  ;;  %v59_v37 = vld [vmem:[#allocation4 + $0xb0] sm:$0xff] }
  0x2e   :  { %198 = vmatprep.subr.mxu0 %v46_v14  ;;  %734 = vmatprep.subr.bf16.mxu1 %v733_v23  ;;  %v741_v36 = vpack.c.bf16 %v62_v34, %v60_v33  ;;  %v61_v38 = vld [vmem:[#allocation4 + $0xc0] sm:$0xff]  ;;  %v64_v39 = vld [vmem:[#allocation4 + $0xd8] sm:$0xff]  ;;  %v66_v40 = vld [vmem:[#allocation4 + $0xe8] sm:$0xff] }
  0x2f   :  { %v743_v41 = vpack.c.bf16 %v61_v38, %v59_v37  ;;  %v745_v42 = vpack.c.bf16 %v66_v40, %v64_v39  ;;  %v63_v43 = vld [vmem:[#allocation4 + $0xd0] sm:$0xff]  ;;  %v65_v44 = vld [vmem:[#allocation4 + $0xe0] sm:$0xff]  ;;  %v68_v45 = vld [vmem:[#allocation4 + $0xf8] sm:$0xff] }
  0x30   :  { %v70_v46 = vld [vmem:[#allocation4 + $0x108] sm:$0xff]  ;;  %v747_v47 = vpack.c.bf16 %v65_v44, %v63_v43  ;;  %v67_v49 = vld [vmem:[#allocation4 + $0xf0] sm:$0xff]  ;;  %v69_v50 = vld [vmem:[#allocation4 + $0x100] sm:$0xff] }
  0x31   :  { %199 = vmatpush1.msra.mxu0 %v45_v28  ;;  %736 = vmatpush1.bf16.msra.mxu1 %v735_v27  ;;  %v749_v48 = vpack.c.bf16 %v70_v46, %v68_v45  ;;  %v72_v51 = vld [vmem:[#allocation4 + $0x118] sm:$0xff]  ;;  %v74_v52 = vld [vmem:[#allocation4 + $0x128] sm:$0xff]  ;;  %v751_v53 = vpack.c.bf16 %v69_v50, %v67_v49  ;;  %v71_v55 = vld [vmem:[#allocation4 + $0x110] sm:$0xff] }
  0x32   :  { %581 = vmatmul.mubr.msk.f32.vlgmr.msra.gmra.mrb[0].mxu0 %vm186_vm0, %v177_v32  ;;  %738 = vmatprep.subr.bf16.mxu1 %v737_v29  ;;  %v753_v54 = vpack.c.bf16 %v74_v52, %v72_v51  ;;  %v73_v56 = vld [vmem:[#allocation4 + $0x120] sm:$0xff]  ;;  %v76_v57 = vld [vmem:[#allocation4 + $0x138] sm:$0xff]  ;;  %v78_v58 = vld [vmem:[#allocation4 + $0x148] sm:$0xff] }
  0x33   :  { %v755_v59 = vpack.c.bf16 %v73_v56, %v71_v55  ;;  %v757_v60 = vpack.c.bf16 %v78_v58, %v76_v57  ;;  %v75_v61 = vld [vmem:[#allocation4 + $0x130] sm:$0xff]  ;;  %v77_v62 = vld [vmem:[#allocation4 + $0x140] sm:$0xff]  ;;  %v80_v63 = vld [vmem:[#allocation4 + $0x158] sm:$0xff] }
  0x34   :  { %v82_v1 = vld [vmem:[#allocation4 + $0x168] sm:$0xff]  ;;  %v759_v2 = vpack.c.bf16 %v77_v62, %v75_v61  ;;  %v79_v4 = vld [vmem:[#allocation4 + $0x150] sm:$0xff]  ;;  %v81_v5 = vld [vmem:[#allocation4 + $0x160] sm:$0xff] }
  0x35   :  { %740 = vmatpush1.bf16.msra.mxu1 %v739_v35  ;;  %v761_v3 = vpack.c.bf16 %v82_v1, %v80_v63  ;;  %v84_v6 = vld [vmem:[#allocation4 + $0x178] sm:$0xff]  ;;  %v86_v7 = vld [vmem:[#allocation4 + $0x188] sm:$0xff]  ;;  %v763_v8 = vpack.c.bf16 %v81_v5, %v79_v4  ;;  %v83_v10 = vld [vmem:[#allocation4 + $0x170] sm:$0xff] }
  0x36   :  { %742 = vmatprep.subr.bf16.mxu1 %v741_v36  ;;  %v765_v9 = vpack.c.bf16 %v86_v7, %v84_v6  ;;  %v85_v11 = vld [vmem:[#allocation4 + $0x180] sm:$0xff]  ;;  %v88_v12 = vld [vmem:[#allocation4 + $0x198] sm:$0xff]  ;;  %v90_v13 = vld [vmem:[#allocation4 + $0x1a8] sm:$0xff] }
  0x37   :  { %v767_v14 = vpack.c.bf16 %v85_v11, %v83_v10  ;;  %v769_v15 = vpack.c.bf16 %v90_v13, %v88_v12  ;;  %v87_v16 = vld [vmem:[#allocation4 + $0x190] sm:$0xff]  ;;  %v89_v17 = vld [vmem:[#allocation4 + $0x1a0] sm:$0xff]  ;;  %v92_v18 = vld [vmem:[#allocation4 + $0x1b8] sm:$0xff] }
  0x38   :  { %v94_v19 = vld [vmem:[#allocation4 + $0x1c8] sm:$0xff]  ;;  %v771_v20 = vpack.c.bf16 %v89_v17, %v87_v16  ;;  %v91_v22 = vld [vmem:[#allocation4 + $0x1b0] sm:$0xff]  ;;  %v93_v23 = vld [vmem:[#allocation4 + $0x1c0] sm:$0xff] }
  0x39   :  { %744 = vmatpush1.bf16.msra.mxu1 %v743_v41  ;;  %v773_v21 = vpack.c.bf16 %v94_v19, %v92_v18  ;;  %v96_v24 = vld [vmem:[#allocation4 + $0x1d8] sm:$0xff]  ;;  %v98_v25 = vld [vmem:[#allocation4 + $0x1e8] sm:$0xff]  ;;  %v775_v26 = vpack.c.bf16 %v93_v23, %v91_v22  ;;  %v95_v28 = vld [vmem:[#allocation4 + $0x1d0] sm:$0xff]  ;;  %v178_v22 = vlaneseq }
  0x3a   :  { %746 = vmatprep.subr.bf16.mxu1 %v745_v42  ;;  %v777_v27 = vpack.c.bf16 %v98_v25, %v96_v24  ;;  %v97_v29 = vld [vmem:[#allocation4 + $0x1e0] sm:$0xff]  ;;  %v100_v30 = vld [vmem:[#allocation4 + $0x1f8] sm:$0xff]  ;;  %v102_v31 = vld [vmem:[#allocation4 + $0x208] sm:$0xff] }
  0x3b   :  { %v779_v32 = vpack.c.bf16 %v97_v29, %v95_v28  ;;  %v781_v33 = vpack.c.bf16 %v102_v31, %v100_v30  ;;  %v99_v34 = vld [vmem:[#allocation4 + $0x1f0] sm:$0xff]  ;;  %v101_v35 = vld [vmem:[#allocation4 + $0x200] sm:$0xff]  ;;  %v104_v37 = vld [vmem:[#allocation4 + $0x218] sm:$0xff]  ;;  %v982_v23 = vshrl.u32 %v178_v22, 7 }
  0x3c   :  { %v783_v36 = vpack.c.bf16 %v101_v35, %v99_v34  ;;  %v106_v38 = vld [vmem:[#allocation4 + $0x228] sm:$0xff]  ;;  %v103_v40 = vld [vmem:[#allocation4 + $0x210] sm:$0xff]  ;;  %v105_v41 = vld [vmem:[#allocation4 + $0x220] sm:$0xff] }
  0x3d   :  { %748 = vmatpush1.bf16.msra.mxu1 %v747_v47  ;;  %v785_v39 = vpack.c.bf16 %v106_v38, %v104_v37  ;;  %v787_v42 = vpack.c.bf16 %v105_v41, %v103_v40  ;;  %v108_v43 = vld [vmem:[#allocation4 + $0x238] sm:$0xff]  ;;  %v110_v44 = vld [vmem:[#allocation4 + $0x248] sm:$0xff]  ;;  %v107_v46 = vld [vmem:[#allocation4 + $0x230] sm:$0xff]  ;;  %v180_v24 = vsub.s32 0, %v982_v23 }
  0x3e   :  { %750 = vmatprep.subr.bf16.mxu1 %v749_v48  ;;  %v789_v45 = vpack.c.bf16 %v110_v44, %v108_v43  ;;  %v109_v47 = vld [vmem:[#allocation4 + $0x240] sm:$0xff]  ;;  %v127_v49 = vld [vmem:[#allocation4 + $0x350] sm:$0xff] }
  0x3f   :  { %v791_v48 = vpack.c.bf16 %v109_v47, %v107_v46  ;;  %v128_v50 = vld [vmem:[#allocation4 + $0x360] sm:$0xff]  ;;  %v111_v51 = vld [vmem:[#allocation4 + $0x250] sm:$0xff] }
  0x40   :  { %v793_v52 = vpack.c.bf16 %v128_v50, %v127_v49  ;;  %v130_v55 = vld [vmem:[#allocation4 + $0x380] sm:$0xff]  ;;  %v113_v58 = vld [vmem:[#allocation4 + $0x270] sm:$0xff]  ;;  %v933_v49 = vmov 0.0|0.0   ;;  %v267_v50 = vsub.s32 1, %v982_v23 }
  0x41   :  { %752 = vmatpush1.bf16.msra.mxu1 %v751_v53  ;;  %v112_v53 = vld [vmem:[#allocation4 + $0x260] sm:$0xff]  ;;  %v115_v1 = vld [vmem:[#allocation4 + $0x290] sm:$0xff] }
  0x42   :  { %754 = vmatprep.subr.bf16.mxu1 %v753_v54  ;;  %v129_v54 = vld [vmem:[#allocation4 + $0x370] sm:$0xff]  ;;  %v795_v56 = vpack.c.bf16 %v112_v53, %v111_v51  ;;  %794 = vmatprep.subr.bf16.mxu0 %v793_v52  ;;  %v132_v61 = vld [vmem:[#allocation4 + $0x3a0] sm:$0xff] }
  0x43   :  { %v797_v57 = vpack.c.bf16 %v130_v55, %v129_v54  ;;  %v134_v4 = vld [vmem:[#allocation4 + $0x3c0] sm:$0xff]  ;;  %v117_v7 = vld [vmem:[#allocation4 + $0x2b0] sm:$0xff] }
  0x44   :  { %796 = vmatpush3.bf16.msra.mxu0 %v795_v56  ;;  %v136_v10 = vld [vmem:[#allocation4 + $0x3e0] sm:$0xff]  ;;  %v119_v13 = vld [vmem:[#allocation4 + $0x2d0] sm:$0xff] }
  0x45   :  { %756 = vmatpush1.bf16.msra.mxu1 %v755_v59  ;;  %v114_v59 = vld [vmem:[#allocation4 + $0x280] sm:$0xff]  ;;  %798 = vmatprep.subr.bf16.mxu0 %v797_v57  ;;  %v121_v19 = vld [vmem:[#allocation4 + $0x2f0] sm:$0xff] }
  0x46   :  { %758 = vmatprep.subr.bf16.mxu1 %v757_v60  ;;  %v131_v60 = vld [vmem:[#allocation4 + $0x390] sm:$0xff]  ;;  %v799_v62 = vpack.c.bf16 %v114_v59, %v113_v58  ;;  %v138_v16 = vld [vmem:[#allocation4 + $0x400] sm:$0xff] }
  0x47   :  { %v801_v63 = vpack.c.bf16 %v132_v61, %v131_v60  ;;  %v985_v25 = vld [vmem:[#allocation4 + $0x650] sm:$0xff]  ;;  %v140_v38 = vld [vmem:[#allocation4 + $0x420] sm:$0xff] }
  0x48   :  { %800 = vmatpush3.bf16.msra.mxu0 %v799_v62  ;;  %v139_v37 = vld [vmem:[#allocation4 + $0x410] sm:$0xff]  ;;  %v124_v41 = vld [vmem:[#allocation4 + $0x320] sm:$0xff]  ;;  %v268_v51 = vrot.slane %v985_v25, %v267_v50 }
  0x49   :  { %760 = vmatpush1.bf16.msra.mxu1 %v759_v2  ;;  %v116_v2 = vld [vmem:[#allocation4 + $0x2a0] sm:$0xff]  ;;  %802 = vmatprep.subr.bf16.mxu0 %v801_v63  ;;  %v123_v40 = vld [vmem:[#allocation4 + $0x310] sm:$0xff] }
  0x4a   :  { %762 = vmatprep.subr.bf16.mxu1 %v761_v3  ;;  %v133_v3 = vld [vmem:[#allocation4 + $0x3b0] sm:$0xff]  ;;  %v803_v5 = vpack.c.bf16 %v116_v2, %v115_v1  ;;  %v142_v44 = vld [vmem:[#allocation4 + $0x440] sm:$0xff] }
  0x4b   :  { %v805_v6 = vpack.c.bf16 %v134_v4, %v133_v3  ;;  %v141_v43 = vld [vmem:[#allocation4 + $0x430] sm:$0xff]  ;;  %v126_v47 = vld [vmem:[#allocation4 + $0x340] sm:$0xff] }
  0x4c   :  { %804 = vmatpush3.bf16.msra.mxu0 %v803_v5  ;;  %v125_v46 = vld [vmem:[#allocation4 + $0x330] sm:$0xff]  ;;  %v144_v59 = vld [vmem:[#allocation4 + $0x460] sm:$0xff] }
  0x4d   :  { %764 = vmatpush1.bf16.msra.mxu1 %v763_v8  ;;  %v118_v8 = vld [vmem:[#allocation4 + $0x2c0] sm:$0xff]  ;;  %806 = vmatprep.subr.bf16.mxu0 %v805_v6  ;;  %v143_v58 = vld [vmem:[#allocation4 + $0x450] sm:$0xff] }
  0x4e   :  { %766 = vmatprep.subr.bf16.mxu1 %v765_v9  ;;  %v135_v9 = vld [vmem:[#allocation4 + $0x3d0] sm:$0xff]  ;;  %v807_v11 = vpack.c.bf16 %v118_v8, %v117_v7  ;;  %v826_v62 = vpack.c.bf16 %v144_v59, %v143_v58  ;;  %v146_v2 = vld [vmem:[#allocation4 + $0x480] sm:$0xff] }
  0x4f   :  { %v809_v12 = vpack.c.bf16 %v136_v10, %v135_v9  ;;  %v145_v1 = vld [vmem:[#allocation4 + $0x470] sm:$0xff]  ;;  %v148_v5 = vld [vmem:[#allocation4 + $0x4a0] sm:$0xff] }
  0x50   :  { %808 = vmatpush3.bf16.msra.mxu0 %v807_v11  ;;  %v829_v3 = vpack.c.bf16 %v146_v2, %v145_v1  ;;  %v147_v4 = vld [vmem:[#allocation4 + $0x490] sm:$0xff]  ;;  %v150_v8 = vld [vmem:[#allocation4 + $0x4c0] sm:$0xff] }
  0x51   :  { %768 = vmatpush1.bf16.msra.mxu1 %v767_v14  ;;  %v120_v14 = vld [vmem:[#allocation4 + $0x2e0] sm:$0xff]  ;;  %810 = vmatprep.subr.bf16.mxu0 %v809_v12  ;;  %v832_v6 = vpack.c.bf16 %v148_v5, %v147_v4  ;;  %v149_v7 = vld [vmem:[#allocation4 + $0x4b0] sm:$0xff] }
  0x52   :  { %770 = vmatprep.subr.bf16.mxu1 %v769_v15  ;;  %v137_v15 = vld [vmem:[#allocation4 + $0x3f0] sm:$0xff]  ;;  %v811_v17 = vpack.c.bf16 %v120_v14, %v119_v13  ;;  %v835_v9 = vpack.c.bf16 %v150_v8, %v149_v7  ;;  %v152_v11 = vld [vmem:[#allocation4 + $0x4e0] sm:$0xff] }
  0x53   :  { %v813_v18 = vpack.c.bf16 %v138_v16, %v137_v15  ;;  %v151_v10 = vld [vmem:[#allocation4 + $0x4d0] sm:$0xff]  ;;  %v154_v14 = vld [vmem:[#allocation4 + $0x500] sm:$0xff] }
  0x54   :  { %812 = vmatpush3.bf16.msra.mxu0 %v811_v17  ;;  %v838_v12 = vpack.c.bf16 %v152_v11, %v151_v10  ;;  %v153_v13 = vld [vmem:[#allocation4 + $0x4f0] sm:$0xff]  ;;  %v156_v17 = vld [vmem:[#allocation4 + $0x520] sm:$0xff] }
  0x55   :  { %772 = vmatpush1.bf16.msra.mxu1 %v771_v20  ;;  %v122_v20 = vld [vmem:[#allocation4 + $0x300] sm:$0xff]  ;;  %814 = vmatprep.subr.bf16.mxu0 %v813_v18  ;;  %v841_v15 = vpack.c.bf16 %v154_v14, %v153_v13  ;;  %v155_v16 = vld [vmem:[#allocation4 + $0x510] sm:$0xff] }
  0x56   :  { %774 = vmatprep.subr.bf16.mxu1 %v773_v21  ;;  %v815_v21 = vpack.c.bf16 %v122_v20, %v121_v19  ;;  %v844_v18 = vpack.c.bf16 %v156_v17, %v155_v16  ;;  %v157_v19 = vld [vmem:[#allocation4 + $0x530] sm:$0xff]  ;;  %v158_v20 = vld [vmem:[#allocation4 + $0x540] sm:$0xff] }
  0x57   :  { %v159_v22 = vld [vmem:[#allocation4 + $0x550] sm:$0xff] }
  0x58   :  { %816 = vmatpush3.bf16.msra.mxu0 %v815_v21  ;;  %v847_v21 = vpack.c.bf16 %v158_v20, %v157_v19 }
  0x59   :  { %776 = vmatpush1.bf16.msra.mxu1 %v775_v26  ;;  %v987_v26 = vld [vmem:[#allocation4 + $0x658] sm:$0xff] }
  0x5a   :  { %778 = vmatprep.subr.bf16.mxu1 %v777_v27  ;;  %v181_v27 = vrot.slane %v985_v25, %v180_v24  ;;  %v185_v28 = vrot.slane %v987_v26, %v180_v24  ;;  %v272_v52 = vrot.slane %v987_v26, %v267_v50  ;;  %v160_v24 = vld [vmem:[#allocation4 + $0x560] sm:$0xff] }
  0x5d   :  { %780 = vmatpush1.bf16.msra.mxu1 %v779_v32 }
  0x5e   :  { %782 = vmatprep.subr.bf16.mxu1 %v781_v33 }
  0x61   :  { %784 = vmatpush1.bf16.msra.mxu1 %v783_v36 }
  0x62   :  { %786 = vmatprep.subr.bf16.mxu1 %v785_v39  ;;  %v817_v39 = vpack.c.bf16 %v140_v38, %v139_v37  ;;  %v168_v37 = vld [vmem:[#allocation4 + $0x5e0] sm:$0xff] }
  0x64   :  { %818 = vmatprep.subr.bf16.mxu0 %v817_v39  ;;  %v169_v39 = vld [vmem:[#allocation4 + $0x5f0] sm:$0xff] }
  0x65   :  { %788 = vmatpush1.bf16.msra.mxu1 %v787_v42  ;;  %v819_v42 = vpack.c.bf16 %v124_v41, %v123_v40  ;;  %v170_v40 = vld [vmem:[#allocation4 + $0x600] sm:$0xff] }
  0x66   :  { %790 = vmatprep.subr.bf16.mxu1 %v789_v45  ;;  %v821_v45 = vpack.c.bf16 %v142_v44, %v141_v43  ;;  %v865_v41 = vpack.c.bf16 %v170_v40, %v169_v39 }
  0x67   :  { %820 = vmatpush3.bf16.msra.mxu0 %v819_v42  ;;  %v350_v42 = vsub.s32 2, %v982_v23 }
  0x68   :  { %822 = vmatprep.subr.bf16.mxu0 %v821_v45 }
  0x69   :  { %792 = vmatpush1.bf16.msra.mxu1 %v791_v48  ;;  %v823_v48 = vpack.c.bf16 %v126_v47, %v125_v46  ;;  %v351_v44 = vrot.slane %v985_v25, %v350_v42 }
  0x6a   :  { %849 = vmatprep.subr.bf16.mxu1 %v933_v49 }
  0x6b   :  { %824 = vmatpush3.bf16.msra.mxu0 %v823_v48 }
  0x6c   :  { %825 = vmatprep.subr.bf16.mxu0 %v933_v49 }
 0x105   :  { %v256_v29 = vpop.f32.mrb[0].mxu0 }
 0x106   :  { %v257_v30 = vadd.f32 %v256_v29, %v181_v27  ;;  %v258_v31 = vpop.f32.mrb[1].mxu0  ;;  %v161_v27 = vld [vmem:[#allocation4 + $0x570] sm:$0xff]  ;;  %v162_v29 = vld [vmem:[#allocation4 + $0x580] sm:$0xff] }
 0x107   :  { %v259_v32 = vadd.f32 %v258_v31, %v185_v28  ;;  %v850_v28 = vpack.c.bf16 %v160_v24, %v159_v22  ;;  %v163_v31 = vld [vmem:[#allocation4 + $0x590] sm:$0xff] }
 0x108   :  { %v261_v33 = vmul.f32 0.01, %v257_v30 }
 0x109   :  { %v262_v34 = vmul.f32 0.01, %v259_v32 }
 0x10a   :  { %v263_v36 = vmax.f32 %v257_v30, %v261_v33  ;;  %v853_v30 = vpack.c.bf16 %v162_v29, %v161_v27 }
 0x10b   :  { %v264_v35 = vmax.f32 %v259_v32, %v262_v34  ;;  %v164_v32 = vld [vmem:[#allocation4 + $0x5a0] sm:$0xff]  ;;  %v165_v34 = vld [vmem:[#allocation4 + $0x5b0] sm:$0xff] }
 0x10c   :  { %v856_v33 = vpack.c.bf16 %v164_v32, %v163_v31 }
 0x10d   :  { %337 = vmatprep.mubr.f32.mxu1 %v264_v35  ;;  %v166_v35 = vld [vmem:[#allocation4 + $0x5c0] sm:$0xff] }
 0x10e   :  { %338 = vmatmul.mubr.f32.vlgmr.msra.gmra.mrb[0].mxu1 %v263_v36  ;;  %v859_v36 = vpack.c.bf16 %v166_v35, %v165_v34 }
 0x10f   :  { %718 = vmatprep.mubr.msk.f32.mxu1 %vm934_vm1, %v932_v0  ;;  %851 = vmatpush3.bf16.msra.mxu1 %v850_v28 }
 0x110   :  { %852 = vmatprep.subr.bf16.mxu1 %v933_v49 }
 0x113   :  { %854 = vmatpush3.bf16.msra.mxu1 %v853_v30 }
 0x114   :  { %855 = vmatprep.subr.bf16.mxu1 %v933_v49 }
 0x117   :  { %857 = vmatpush3.bf16.msra.mxu1 %v856_v33 }
 0x118   :  { %858 = vmatprep.subr.bf16.mxu1 %v933_v49 }
 0x11b   :  { %860 = vmatpush3.bf16.msra.mxu1 %v859_v36 }
 0x11c   :  { %861 = vmatprep.subr.bf16.mxu1 %v933_v49 }
 0x1e1   :  { %v339_v53 = vpop.f32.mrb[0].mxu1 }
 0x1e2   :  { %v340_v54 = vadd.f32 %v339_v53, %v268_v51  ;;  %v341_v55 = vpop.f32.mrb[1].mxu1  ;;  %v171_v51 = vld [vmem:[#allocation4 + $0x610] sm:$0xff] }
 0x1e3   :  { %v342_v56 = vadd.f32 %v341_v55, %v272_v52  ;;  %v172_v52 = vld [vmem:[#allocation4 + $0x620] sm:$0xff] }
 0x1e4   :  { %v344_v57 = vmul.f32 0.01, %v340_v54  ;;  %v868_v53 = vpack.c.bf16 %v172_v52, %v171_v51  ;;  %v174_v55 = vld [vmem:[#allocation4 + $0x640] sm:$0xff] }
 0x1e5   :  { %v345_v60 = vmul.f32 0.01, %v342_v56 }
 0x1e6   :  { %v346_v63 = vmax.f32 %v340_v54, %v344_v57  ;;  %v173_v54 = vld [vmem:[#allocation4 + $0x630] sm:$0xff]  ;;  %v427_v57 = vrot.slane %v987_v26, %v350_v42 }
 0x1e7   :  { %v347_v61 = vmax.f32 %v342_v56, %v345_v60  ;;  %v871_v56 = vpack.c.bf16 %v174_v55, %v173_v54 }
 0x1e9   :  { %416 = vmatprep.mubr.f32.mxu0 %v347_v61 }
 0x1ea   :  { %417 = vmatmul.mubr.f32.vlgmr.msra.gmra.mrb[2].mxu0 %v346_v63  ;;  %v502_v63 = vsub.s32 3, %v982_v23 }
 0x1eb   :  { %827 = vmatpush3.bf16.msra.mxu0 %v826_v62  ;;  %683 = vmatprep.mubr.msk.f32.mxu0 %vm934_vm1, %v932_v0  ;;  %v167_v0 = vld [vmem:[#allocation4 + $0x5d0] sm:$0xff] }
 0x1ec   :  { %828 = vmatprep.subr.bf16.mxu0 %v933_v49  ;;  %v862_v38 = vpack.c.bf16 %v168_v37, %v167_v0  ;;  %v503_v1 = vrot.slane %v985_v25, %v502_v63 }
 0x1ee   :  { %863 = vmatpush3.bf16.msra.mxu1 %v862_v38 }
 0x1ef   :  { %830 = vmatpush3.bf16.msra.mxu0 %v829_v3  ;;  %864 = vmatprep.subr.bf16.mxu1 %v933_v49 }
 0x1f0   :  { %831 = vmatprep.subr.bf16.mxu0 %v933_v49 }
 0x1f2   :  { %866 = vmatpush3.bf16.msra.mxu1 %v865_v41 }
 0x1f3   :  { %833 = vmatpush3.bf16.msra.mxu0 %v832_v6  ;;  %867 = vmatprep.subr.bf16.mxu1 %v933_v49 }
 0x1f4   :  { %834 = vmatprep.subr.bf16.mxu0 %v933_v49 }
 0x1f6   :  { %869 = vmatpush3.bf16.msra.mxu1 %v868_v53 }
 0x1f7   :  { %836 = vmatpush3.bf16.msra.mxu0 %v835_v9  ;;  %870 = vmatprep.subr.bf16.mxu1 %v933_v49 }
 0x1f8   :  { %837 = vmatprep.subr.bf16.mxu0 %v933_v49 }
 0x1fa   :  { %872 = vmatpush3.bf16.msra.mxu1 %v871_v56 }
 0x1fb   :  { %839 = vmatpush3.bf16.msra.mxu0 %v838_v12 }
 0x1fc   :  { %840 = vmatprep.subr.bf16.mxu0 %v933_v49 }
 0x1ff   :  { %842 = vmatpush3.bf16.msra.mxu0 %v841_v15 }
 0x200   :  { %843 = vmatprep.subr.bf16.mxu0 %v933_v49 }
 0x203   :  { %845 = vmatpush3.bf16.msra.mxu0 %v844_v18 }
 0x204   :  { %846 = vmatprep.subr.bf16.mxu0 %v933_v49 }
 0x207   :  { %848 = vmatpush3.bf16.msra.mxu0 %v847_v21 }
 0x2bd   :  { %v614_v43 = vpop.f32.mrb[2].mxu0 }
 0x2be   :  { %v615_v45 = vpop.f32.mrb[3].mxu0 }
 0x2bf   :  { %v616_v46 = vadd.f32 %v615_v45, %v614_v43 }
 0x2c1   :  { %v419_v47 = vadd.f32 %v616_v46, %v351_v44 }
 0x2c3   :  { %v422_v48 = vmul.f32 0.01, %v419_v47 }
 0x2c5   :  { %v423_v50 = vmax.f32 %v419_v47, %v422_v48 }
 0x2c7   :  { %684 = vmatmul.mubr.f32.vlgmr.msra.gmra.mrb[4].mxu0 %v423_v50 }
 0x39a   :  { %v494_v58 = vpop.f32.mrb[4].mxu0 }
 0x39b   :  { %v495_v59 = vadd.f32 %v494_v58, %v427_v57  ;;  %v685_v60 = vpop.f32.mrb[5].mxu0 }
 0x39d   :  { %v498_v61 = vmul.f32 0.01, %v495_v59 }
 0x39f   :  { %v499_v62 = vmax.f32 %v495_v59, %v498_v61 }
 0x3a1   :  { %719 = vmatmul.mubr.f32.vlgmr.msra.gmra.mrb[2].mxu1 %v499_v62 }
 0x474   :  { %v570_v2 = vpop.f32.mrb[2].mxu1 }
 0x475   :  { %v571_v3 = vadd.f32 %v570_v2, %v503_v1  ;;  %v720_v4 = vpop.f32.mrb[3].mxu1 }
 0x477   :  { %574 = vst [vmem:[%s1022_s2] sm:$0xff] %v571_v3 }
 0x478   :  { %579 = vsyncpa [#allocation3], 1 }
 0x479   :  { %580 = vsyncpa [#allocation5], 1 }

</bundles_post_ra>
